<compile_context>
chip_gen: v7x
topology: tpu7x:2x2x1
jax: 0.10.0
libtpu: 0.0.40
codegen_flags: <defaults>
</compile_context>

<pallas_src>
import math

import jax
import jax.numpy as jnp
from jax.experimental import pallas as pl
from jax.experimental.pallas import tpu as pltpu


def _critic_kernel(x_ref, w1_ref, b1_ref, w2_ref, b2_ref, w3_ref, b3_ref, o_ref):
    # fc1 + ReLU  (MXU, f32 accumulate)
    h1 = jnp.dot(x_ref[...], w1_ref[...], preferred_element_type=jnp.float32)
    h1 = jnp.maximum(h1 + b1_ref[...], 0.0)
    # fc2 + ReLU  (MXU, f32 accumulate)
    h2 = jnp.dot(h1, w2_ref[...], preferred_element_type=jnp.float32)
    h2 = jnp.maximum(h2 + b2_ref[...], 0.0)
    # fc3 value head (out_features = 1): VPU multiply + lane reduction instead of an
    # N=1 MXU matmul.  w3 is stored as a (1, F2) row.
    v = jnp.sum(h2 * w3_ref[...], axis=-1)          # (TM,)
    v = v[None, :] + b3_ref[...]                    # (1, TM), lane-dense
    o_ref[...] = v.astype(o_ref.dtype)


def critic_forward(state, params, *, block_rows=128):
    """Fused 3-layer critic MLP forward pass.

    state : (B, D) float32
    params: dict with w1 (D, F1), b1 (1, F1), w2 (F1, F2), b2 (1, F2),
            w3 (1, F2), b3 (1, 1).  Weights stored as (in_features, out_features);
            the value-head weight is a row vector.
    returns (B, 1) float32 value estimates.

    block_rows: batch tile size (multiple of 8).  128 is a good default (fills the
    v5e MXU); use 256 on v6e/v7x for large rollout batches.
    """
    w1, b1 = params["w1"], params["b1"]
    w2, b2 = params["w2"], params["b2"]
    w3, b3 = params["w3"], params["b3"]

    B, D = state.shape
    F1 = w1.shape[1]
    F2 = w2.shape[1]

    tm = block_rows
    nt = pl.cdiv(B, tm)
    b_pad = nt * tm
    if b_pad != B:
        # Pad the batch so every grid step sees a full (tm, D) block; padded rows
        # are computed and discarded (cheap vs. masked partial blocks).
        state = jnp.pad(state, ((0, b_pad - B), (0, 0)))

    out = pl.pallas_call(
        _critic_kernel,
        out_shape=jax.ShapeDtypeStruct((1, b_pad), jnp.float32),
        grid=(nt,),
        in_specs=[
            pl.BlockSpec((tm, D), lambda i: (i, 0)),     # state: tiled over the batch
            pl.BlockSpec((D, F1), lambda i: (0, 0)),     # weights/biases: VMEM-resident
            pl.BlockSpec((1, F1), lambda i: (0, 0)),
            pl.BlockSpec((F1, F2), lambda i: (0, 0)),
            pl.BlockSpec((1, F2), lambda i: (0, 0)),
            pl.BlockSpec((1, F2), lambda i: (0, 0)),     # w3 as a (1, F2) row
            pl.BlockSpec((1, 1), lambda i: (0, 0)),
        ],
        out_specs=pl.BlockSpec((1, tm), lambda i: (0, i)),   # lane-dense value slab
        compiler_params=pltpu.CompilerParams(
            dimension_semantics=("parallel",),
        ),
    )(state, w1, b1, w2, b2, w3, b3)

    # (1, B_pad) lane-dense slab -> (B, 1) column; pure layout plumbing in the wrapper.
    return out.reshape(b_pad, 1)[:B]


def init_critic_params(key, input_dim, fc1_dim=256, fc2_dim=256):
    """Deterministic init mimicking PyTorch nn.Linear default:
    U(-1/sqrt(fan_in), 1/sqrt(fan_in)) for weights and biases.
    Weights stored as (in_features, out_features); w3 stored as a (1, fc2_dim) row."""
    keys = jax.random.split(key, 6)

    def uniform(k, shape, fan_in):
        bound = 1.0 / math.sqrt(fan_in)
        return jax.random.uniform(k, shape, jnp.float32, -bound, bound)

    return {
        "w1": uniform(keys[0], (input_dim, fc1_dim), input_dim),
        "b1": uniform(keys[1], (1, fc1_dim), input_dim),
        "w2": uniform(keys[2], (fc1_dim, fc2_dim), fc1_dim),
        "b2": uniform(keys[3], (1, fc2_dim), fc1_dim),
        "w3": uniform(keys[4], (1, fc2_dim), fc2_dim),
        "b3": uniform(keys[5], (1, 1), fc2_dim),
    }


def critic_ref(state, params):
    """Pure-JAX reference (mathematically identical to the PyTorch Sequential)."""
    h1 = jnp.maximum(state @ params["w1"] + params["b1"], 0.0)
    h2 = jnp.maximum(h1 @ params["w2"] + params["b2"], 0.0)
    return jnp.sum(h2 * params["w3"], axis=-1, keepdims=True) + params["b3"]


if __name__ == "__main__":
    key = jax.random.PRNGKey(0)
    k_param, k_state = jax.random.split(key)

    batch, input_dim = 8, 8   # small shapes: input_dims=(8,), batch of 8 states
    params = init_critic_params(k_param, input_dim, fc1_dim=256, fc2_dim=256)
    state = jax.random.normal(k_state, (batch, input_dim), jnp.float32)

    value = critic_forward(state, params)
    value = jax.block_until_ready(value)

    ref = critic_ref(state, params)
    assert value.shape == (batch, 1)
    assert jnp.allclose(value, ref, atol=1e-4, rtol=1e-4), "mismatch vs reference"

    print("KERNEL_OK")
</pallas_src>

<mosaic_0001>
module attributes {stable_mosaic.version = 11 : i64} {
  func.func @_critic_kernel(%arg0: i32, %arg1: memref<128x8xf32, #tpu.memory_space<vmem>>, %arg2: memref<8x256xf32, #tpu.memory_space<vmem>>, %arg3: memref<1x256xf32, #tpu.memory_space<vmem>>, %arg4: memref<256x256xf32, #tpu.memory_space<vmem>>, %arg5: memref<1x256xf32, #tpu.memory_space<vmem>>, %arg6: memref<1x256xf32, #tpu.memory_space<vmem>>, %arg7: memref<1x1xf32, #tpu.memory_space<vmem>>, %arg8: memref<1x128xf32, #tpu.memory_space<vmem>>) attributes {dimension_semantics = [#tpu.dimension_semantics<parallel>], iteration_bounds = array<i64: 1>, scalar_prefetch = 0 : i64, scratch_operands = 0 : i64, tpu.core_type = #tpu.core_type<tc>, window_params = [{transform_indices = @transform_0, window_bounds = array<i64: 128, 8>}, {pipeline_mode = #tpu.pipeline_mode<synchronous>, transform_indices = @transform_1, window_bounds = array<i64: 8, 256>}, {pipeline_mode = #tpu.pipeline_mode<synchronous>, transform_indices = @transform_2, window_bounds = array<i64: 1, 256>}, {pipeline_mode = #tpu.pipeline_mode<synchronous>, transform_indices = @transform_3, window_bounds = array<i64: 256, 256>}, {pipeline_mode = #tpu.pipeline_mode<synchronous>, transform_indices = @transform_4, window_bounds = array<i64: 1, 256>}, {pipeline_mode = #tpu.pipeline_mode<synchronous>, transform_indices = @transform_5, window_bounds = array<i64: 1, 256>}, {pipeline_mode = #tpu.pipeline_mode<synchronous>, transform_indices = @transform_6, window_bounds = array<i64: 1, 1>}, {transform_indices = @transform_7, window_bounds = array<i64: 1, 128>}]} {
    %c0 = arith.constant 0 : index
    %c0_0 = arith.constant 0 : index
    %0 = vector.load %arg1[%c0, %c0_0] : memref<128x8xf32, #tpu.memory_space<vmem>>, vector<128x8xf32>
    %c0_1 = arith.constant 0 : index
    %c0_2 = arith.constant 0 : index
    %1 = vector.load %arg2[%c0_1, %c0_2] : memref<8x256xf32, #tpu.memory_space<vmem>>, vector<8x256xf32>
    %cst = arith.constant dense<0.000000e+00> : vector<128x256xf32>
    %2 = tpu.matmul %0, %1, %cst {dimension_numbers = #tpu.dot_dimension_numbers<[1], [0], [0], [1], [0, 0, 1, 1], [], []>} : vector<128x8xf32>, vector<8x256xf32>, vector<128x256xf32> -> vector<128x256xf32>
    %c0_3 = arith.constant 0 : index
    %c0_4 = arith.constant 0 : index
    %3 = vector.load %arg3[%c0_3, %c0_4] : memref<1x256xf32, #tpu.memory_space<vmem>>, vector<1x256xf32>
    %4 = vector.broadcast %3 : vector<1x256xf32> to vector<128x256xf32>
    %5 = arith.addf %2, %4 : vector<128x256xf32>
    %cst_5 = arith.constant 0.000000e+00 : f32
    %6 = vector.broadcast %cst_5 : f32 to vector<128x256xf32>
    %7 = arith.maximumf %5, %6 : vector<128x256xf32>
    %c0_6 = arith.constant 0 : index
    %c0_7 = arith.constant 0 : index
    %8 = vector.load %arg4[%c0_6, %c0_7] : memref<256x256xf32, #tpu.memory_space<vmem>>, vector<256x256xf32>
    %cst_8 = arith.constant dense<0.000000e+00> : vector<128x256xf32>
    %9 = tpu.matmul %7, %8, %cst_8 {dimension_numbers = #tpu.dot_dimension_numbers<[1], [0], [0], [1], [0, 0, 1, 1], [], []>} : vector<128x256xf32>, vector<256x256xf32>, vector<128x256xf32> -> vector<128x256xf32>
    %c0_9 = arith.constant 0 : index
    %c0_10 = arith.constant 0 : index
    %10 = vector.load %arg5[%c0_9, %c0_10] : memref<1x256xf32, #tpu.memory_space<vmem>>, vector<1x256xf32>
    %11 = vector.broadcast %10 : vector<1x256xf32> to vector<128x256xf32>
    %12 = arith.addf %9, %11 : vector<128x256xf32>
    %cst_11 = arith.constant 0.000000e+00 : f32
    %13 = vector.broadcast %cst_11 : f32 to vector<128x256xf32>
    %14 = arith.maximumf %12, %13 : vector<128x256xf32>
    %c0_12 = arith.constant 0 : index
    %c0_13 = arith.constant 0 : index
    %15 = vector.load %arg6[%c0_12, %c0_13] : memref<1x256xf32, #tpu.memory_space<vmem>>, vector<1x256xf32>
    %16 = vector.broadcast %15 : vector<1x256xf32> to vector<128x256xf32>
    %17 = arith.mulf %14, %16 : vector<128x256xf32>
    %cst_14 = arith.constant dense<0.000000e+00> : vector<128xf32>
    %18 = vector.multi_reduction <add>, %17, %cst_14 [1] : vector<128x256xf32> to vector<128xf32>
    %19 = vector.shape_cast %18 : vector<128xf32> to vector<1x128xf32>
    %c0_15 = arith.constant 0 : index
    %c0_16 = arith.constant 0 : index
    %20 = vector.load %arg7[%c0_15, %c0_16] : memref<1x1xf32, #tpu.memory_space<vmem>>, vector<1x1xf32>
    %21 = vector.broadcast %20 : vector<1x1xf32> to vector<1x128xf32>
    %22 = arith.addf %19, %21 : vector<1x128xf32>
    %c0_17 = arith.constant 0 : index
    %c0_18 = arith.constant 0 : index
    %23 = vector.load %arg8[%c0_17, %c0_18] : memref<1x128xf32, #tpu.memory_space<vmem>>, vector<1x128xf32>
    tpu.vector_store %arg8[%c0_17, %c0_18], %22 {strides = array<i32>} : memref<1x128xf32, #tpu.memory_space<vmem>>, vector<1x128xf32>,
    return
  }
  func.func @transform_0(%arg0: i32) -> (i32, i32) {
    %c0_i32 = arith.constant 0 : i32
    %c0_i32_0 = arith.constant 0 : i32
    return %arg0, %c0_i32 : i32, i32
  }
  func.func @transform_1(%arg0: i32) -> (i32, i32) {
    %c0_i32 = arith.constant 0 : i32
    %c0_i32_0 = arith.constant 0 : i32
    %c0_i32_1 = arith.constant 0 : i32
    return %c0_i32, %c0_i32_0 : i32, i32
  }
  func.func @transform_2(%arg0: i32) -> (i32, i32) {
    %c0_i32 = arith.constant 0 : i32
    %c0_i32_0 = arith.constant 0 : i32
    %c0_i32_1 = arith.constant 0 : i32
    return %c0_i32, %c0_i32_0 : i32, i32
  }
  func.func @transform_3(%arg0: i32) -> (i32, i32) {
    %c0_i32 = arith.constant 0 : i32
    %c0_i32_0 = arith.constant 0 : i32
    %c0_i32_1 = arith.constant 0 : i32
    return %c0_i32, %c0_i32_0 : i32, i32
  }
  func.func @transform_4(%arg0: i32) -> (i32, i32) {
    %c0_i32 = arith.constant 0 : i32
    %c0_i32_0 = arith.constant 0 : i32
    %c0_i32_1 = arith.constant 0 : i32
    return %c0_i32, %c0_i32_0 : i32, i32
  }
  func.func @transform_5(%arg0: i32) -> (i32, i32) {
    %c0_i32 = arith.constant 0 : i32
    %c0_i32_0 = arith.constant 0 : i32
    %c0_i32_1 = arith.constant 0 : i32
    return %c0_i32, %c0_i32_0 : i32, i32
  }
  func.func @transform_6(%arg0: i32) -> (i32, i32) {
    %c0_i32 = arith.constant 0 : i32
    %c0_i32_0 = arith.constant 0 : i32
    %c0_i32_1 = arith.constant 0 : i32
    return %c0_i32, %c0_i32_0 : i32, i32
  }
  func.func @transform_7(%arg0: i32) -> (i32, i32) {
    %c0_i32 = arith.constant 0 : i32
    %c0_i32_0 = arith.constant 0 : i32
    return %c0_i32, %arg0 : i32, i32
  }
}

</mosaic_0001>

<bundles_post_ra>
// kernel: tpu_custom_call.1
= control target key start
LH: loop header
LB: loop body
LE: loop exit
PB: predicated region body
PF: predicated region fallthrough
CT: control target
= control target key end

     0   :  { %s1362_s0 = inlined_call_operand.vmem [shape: f32[128,8], index: 0, kind: input, shape index: {}]   ;;  %s1363_s1 = inlined_call_operand.vmem [shape: f32[8,256], index: 1, kind: input, shape index: {}]   ;;  %s1364_s2 = inlined_call_operand.vmem [shape: f32[1,256], index: 2, kind: input, shape index: {}]   ;;  %s1365_s3 = inlined_call_operand.hbm [shape: f32[256,256], index: 3, kind: input, shape index: {}]   ;;  %s1366_s4 = inlined_call_operand.vmem [shape: f32[1,256], index: 4, kind: input, shape index: {}]   ;;  %s1367_s5 = inlined_call_operand.vmem [shape: f32[1,256], index: 5, kind: input, shape index: {}]   ;;  %s1368_s6 = inlined_call_operand.<no memory space> [shape: f32[1,1], index: 6, kind: input, shape index: {}]   ;;  %s1369_s7 = inlined_call_operand.hbm [shape: f32[1,128], index: 7, kind: output, shape index: {}]  }
   0x1   :  { %v12_v0 = vstv %s1368_s6 }
   0x2   :  { %13 = vst [vmem:[#allocation2] sm:$0x1] %v12_v0 }
   0x3   :  { %14 = vsyncpa [#allocation4], 0 }
   0x4   :  { %15 = vsyncpa [#allocation5], 0  ;;  %s1014_s26 = smov [#allocation3]   ;;  %s966_s30 = scalar_lea.hbm %s1365_s3, 8192 }
   0x5   :  { %s27_s27 = sshll.u32 %s1014_s26, 4  ;;  %p967_p0 = scmp.ne.s32.totalorder %s1365_s3, %s966_s30  ;;  %s28_s27 = int_to_ptr.vmem [resolvable:$true] %s27_s27 }
   0x6   :  { %p970_p1 = scmp.lt.u32.totalorder %s966_s30, %s1365_s3 }
   0x8   :  { %p972_p2 = pnand %p970_p1, %p967_p0 }
   0xa   :  { %975 = shalt.err (!%p972_p2)
}
   0xb   :  { %s976_s6 = scalar_lea.vmem %s28_s27, 8192  ;;  %p981_p4 = scmp.lt.s32.totalorder %s28_s27, %s28_s27 }
   0xc   :  { %p977_p3 = scmp.ne.s32.totalorder %s28_s27, %s976_s6  ;;  %p982_p5 = scmp.lt.s32.totalorder %s976_s6, %s976_s6 }
   0xe   :  { %p983_p6 = por %p982_p5, %p981_p4 }
  0x10   :  { %p984_p7 = pnand %p983_p6, %p977_p3 }
  0x12   :  { %987 = shalt.err (!%p984_p7)
}
  0x13   :  { %s1015_s12 = smov 256   ;;  %s1016_s13 = smov 16  }
  0x14   :  { %33 = dma.hbm_to_vmem [thread:$0]  %s1365_s3, 8192, %s28_s27, [#allocation4], %s1015_s12, %s1015_s12, %s1016_s13  }
  0x15   :  { %1010 = dma.done.wait [#allocation4], 8192  }
  0x16   :  { %1011 = vsyncadd [#allocation4], 4294959104  ;;  %v1017_v1 = vmov 0.0   ;;  %v60_v2 = vld [vmem:[%s1363_s1 + $0x8] sm:$0xff]  ;;  %v59_v3 = vld [vmem:[%s1363_s1] sm:$0xff]  ;;  %vm73_vm0 = vcmask 64512  }
  0x17   :  { %186 = vmatprep.mubr.f32.mxu0 %v1017_v1  ;;  %v43_v4 = vld [vmem:[%s1362_s0] sm:$0xff]  ;;  %122 = vmatprep.subr.mxu0 %v60_v2  ;;  %v44_v5 = vld [vmem:[%s1362_s0 + $0x8] sm:$0xff]  ;;  %v45_v6 = vld [vmem:[%s1362_s0 + $0x10] sm:$0xff]  ;;  %vm729_vm1 = vcmask 130112   ;;  %vm736_vm2 = vcmask 195712   ;;  %vm743_vm3 = vcmask 261312  }
  0x18   :  { %123 = vmatpush1.msra.mxu0 %v59_v3  ;;  %v316_v7 = vld [vmem:[#allocation3 + $0x8] sm:$0xff]  ;;  %v318_v8 = vld [vmem:[#allocation3 + $0x18] sm:$0xff]  ;;  %v315_v9 = vld [vmem:[#allocation3] sm:$0xff]  ;;  %vm750_vm4 = vcmask 326912   ;;  %vm757_vm5 = vcmask 392512   ;;  %vm764_vm6 = vcmask 458112  }
  0x19   :  { %846 = vmatmul.mubr.msk.f32.vlgmr.msra.gmra.mrb[0].mxu0 %vm73_vm0, %v43_v4  ;;  %v862_v10 = vpack.c.bf16 %v318_v8, %v316_v7  ;;  %v317_v11 = vld [vmem:[#allocation3 + $0x10] sm:$0xff]  ;;  %v320_v12 = vld [vmem:[#allocation3 + $0x28] sm:$0xff]  ;;  %v322_v13 = vld [vmem:[#allocation3 + $0x38] sm:$0xff]  ;;  %vm771_vm7 = vcmask 523712   ;;  %vm778_vm8 = vcmask 589312   ;;  %vm785_vm9 = vcmask 654912  }
  0x1a   :  { %192 = vmatprep.mubr.f32.mxu0 %v1017_v1  ;;  %v864_v14 = vpack.c.bf16 %v317_v11, %v315_v9  ;;  %v866_v15 = vpack.c.bf16 %v322_v13, %v320_v12  ;;  %v319_v16 = vld [vmem:[#allocation3 + $0x20] sm:$0xff]  ;;  %v321_v17 = vld [vmem:[#allocation3 + $0x30] sm:$0xff]  ;;  %v324_v18 = vld [vmem:[#allocation3 + $0x48] sm:$0xff]  ;;  %vm792_vm10 = vcmask 720512   ;;  %vm799_vm11 = vcmask 786112  }
  0x1b   :  { %863 = vmatprep.subr.bf16.mxu0 %v862_v10  ;;  %v326_v19 = vld [vmem:[#allocation3 + $0x58] sm:$0xff]  ;;  %926 = vmatprep.subr.bf16.mxu1 %v862_v10  ;;  %v868_v20 = vpack.c.bf16 %v321_v17, %v319_v16  ;;  %v323_v22 = vld [vmem:[#allocation3 + $0x40] sm:$0xff]  ;;  %v325_v23 = vld [vmem:[#allocation3 + $0x50] sm:$0xff]  ;;  %vm806_vm12 = vcmask 851712   ;;  %vm813_vm13 = vcmask 917312   ;;  %vm820_vm14 = vcmask 982912  }
  0x1c   :  { %865 = vmatpush1.bf16.msra.mxu0 %v864_v14  ;;  %942 = vmatpush1.bf16.msra.mxu1 %v864_v14  ;;  %v870_v21 = vpack.c.bf16 %v326_v19, %v324_v18  ;;  %v46_v24 = vld [vmem:[%s1362_s0 + $0x18] sm:$0xff]  ;;  %v328_v25 = vld [vmem:[#allocation3 + $0x68] sm:$0xff]  ;;  %v872_v27 = vpack.c.bf16 %v325_v23, %v323_v22  ;;  %v327_v29 = vld [vmem:[#allocation3 + $0x60] sm:$0xff]  ;;  %vm827_vm15 = vcmask 1048512  }
  0x1d   :  { %847 = vmatmul.mubr.msk.f32.gmra.mrb[2].mxu0 %vm73_vm0, %v44_v5  ;;  %867 = vmatprep.subr.bf16.mxu0 %v866_v15  ;;  %v330_v26 = vld [vmem:[#allocation3 + $0x78] sm:$0xff]  ;;  %v329_v30 = vld [vmem:[#allocation3 + $0x70] sm:$0xff]  ;;  %v332_v32 = vld [vmem:[#allocation3 + $0x88] sm:$0xff] }
  0x1e   :  { %198 = vmatprep.mubr.f32.mxu0 %v1017_v1  ;;  %927 = vmatprep.subr.bf16.mxu1 %v866_v15  ;;  %v874_v28 = vpack.c.bf16 %v330_v26, %v328_v25  ;;  %v47_v31 = vld [vmem:[%s1362_s0 + $0x20] sm:$0xff]  ;;  %v876_v34 = vpack.c.bf16 %v329_v30, %v327_v29  ;;  %v333_v37 = vld [vmem:[#allocation3 + $0x90] sm:$0xff]  ;;  %v48_v38 = vld [vmem:[%s1362_s0 + $0x28] sm:$0xff] }
  0x1f   :  { %v334_v33 = vld [vmem:[#allocation3 + $0x98] sm:$0xff]  ;;  %v331_v36 = vld [vmem:[#allocation3 + $0x80] sm:$0xff]  ;;  %v336_v39 = vld [vmem:[#allocation3 + $0xa8] sm:$0xff] }
  0x20   :  { %869 = vmatpush1.bf16.msra.mxu0 %v868_v20  ;;  %943 = vmatpush1.bf16.msra.mxu1 %v868_v20  ;;  %v878_v35 = vpack.c.bf16 %v334_v33, %v332_v32  ;;  %v338_v40 = vld [vmem:[#allocation3 + $0xb8] sm:$0xff]  ;;  %v880_v41 = vpack.c.bf16 %v333_v37, %v331_v36  ;;  %v335_v43 = vld [vmem:[#allocation3 + $0xa0] sm:$0xff]  ;;  %v337_v44 = vld [vmem:[#allocation3 + $0xb0] sm:$0xff] }
  0x21   :  { %848 = vmatmul.mubr.msk.f32.gmra.mrb[4].mxu0 %vm73_vm0, %v45_v6  ;;  %871 = vmatprep.subr.bf16.mxu0 %v870_v21  ;;  %v882_v42 = vpack.c.bf16 %v338_v40, %v336_v39  ;;  %v49_v45 = vld [vmem:[%s1362_s0 + $0x30] sm:$0xff]  ;;  %v342_v47 = vld [vmem:[#allocation3 + $0xd8] sm:$0xff]  ;;  %v884_v48 = vpack.c.bf16 %v337_v44, %v335_v43  ;;  %v339_v50 = vld [vmem:[#allocation3 + $0xc0] sm:$0xff] }
  0x22   :  { %204 = vmatprep.mubr.f32.mxu0 %v1017_v1  ;;  %928 = vmatprep.subr.bf16.mxu1 %v870_v21  ;;  %v340_v46 = vld [vmem:[#allocation3 + $0xc8] sm:$0xff]  ;;  %v341_v51 = vld [vmem:[#allocation3 + $0xd0] sm:$0xff]  ;;  %v346_v54 = vld [vmem:[#allocation3 + $0xf8] sm:$0xff] }
  0x23   :  { %v886_v49 = vpack.c.bf16 %v342_v47, %v340_v46  ;;  %v50_v52 = vld [vmem:[%s1362_s0 + $0x38] sm:$0xff]  ;;  %v344_v53 = vld [vmem:[#allocation3 + $0xe8] sm:$0xff]  ;;  %v888_v55 = vpack.c.bf16 %v341_v51, %v339_v50  ;;  %v343_v57 = vld [vmem:[#allocation3 + $0xe0] sm:$0xff] }
  0x24   :  { %873 = vmatpush1.bf16.msra.mxu0 %v872_v27  ;;  %944 = vmatpush1.bf16.msra.mxu1 %v872_v27  ;;  %v890_v56 = vpack.c.bf16 %v346_v54, %v344_v53  ;;  %v345_v58 = vld [vmem:[#allocation3 + $0xf0] sm:$0xff]  ;;  %v51_v59 = vld [vmem:[%s1362_s0 + $0x40] sm:$0xff]  ;;  %v348_v60 = vld [vmem:[#allocation3 + $0x108] sm:$0xff] }
  0x25   :  { %849 = vmatmul.mubr.msk.f32.gmra.mrb[6].mxu0 %vm73_vm0, %v46_v24  ;;  %875 = vmatprep.subr.bf16.mxu0 %v874_v28  ;;  %v350_v61 = vld [vmem:[#allocation3 + $0x118] sm:$0xff]  ;;  %v892_v62 = vpack.c.bf16 %v345_v58, %v343_v57  ;;  %v347_v0 = vld [vmem:[#allocation3 + $0x100] sm:$0xff]  ;;  %v349_v2 = vld [vmem:[#allocation3 + $0x110] sm:$0xff] }
  0x26   :  { %210 = vmatprep.mubr.f32.mxu0 %v1017_v1  ;;  %929 = vmatprep.subr.bf16.mxu1 %v874_v28  ;;  %v894_v63 = vpack.c.bf16 %v350_v61, %v348_v60  ;;  %v52_v3 = vld [vmem:[%s1362_s0 + $0x48] sm:$0xff]  ;;  %v354_v5 = vld [vmem:[#allocation3 + $0x138] sm:$0xff]  ;;  %v896_v6 = vpack.c.bf16 %v349_v2, %v347_v0  ;;  %v353_v9 = vld [vmem:[#allocation3 + $0x130] sm:$0xff] }
  0x27   :  { %v352_v4 = vld [vmem:[#allocation3 + $0x128] sm:$0xff]  ;;  %v351_v8 = vld [vmem:[#allocation3 + $0x120] sm:$0xff]  ;;  %v358_v12 = vld [vmem:[#allocation3 + $0x158] sm:$0xff] }
  0x28   :  { %877 = vmatpush1.bf16.msra.mxu0 %v876_v34  ;;  %945 = vmatpush1.bf16.msra.mxu1 %v876_v34  ;;  %v898_v7 = vpack.c.bf16 %v354_v5, %v352_v4  ;;  %v53_v10 = vld [vmem:[%s1362_s0 + $0x50] sm:$0xff]  ;;  %v900_v13 = vpack.c.bf16 %v353_v9, %v351_v8  ;;  %v355_v15 = vld [vmem:[#allocation3 + $0x140] sm:$0xff]  ;;  %v54_v17 = vld [vmem:[%s1362_s0 + $0x58] sm:$0xff] }
  0x29   :  { %850 = vmatmul.mubr.msk.f32.gmra.mrb[8].mxu0 %vm73_vm0, %v47_v31  ;;  %879 = vmatprep.subr.bf16.mxu0 %v878_v35  ;;  %v356_v11 = vld [vmem:[#allocation3 + $0x148] sm:$0xff]  ;;  %v357_v16 = vld [vmem:[#allocation3 + $0x150] sm:$0xff]  ;;  %v362_v19 = vld [vmem:[#allocation3 + $0x178] sm:$0xff] }
  0x2a   :  { %216 = vmatprep.mubr.f32.mxu0 %v1017_v1  ;;  %930 = vmatprep.subr.bf16.mxu1 %v878_v35  ;;  %v902_v14 = vpack.c.bf16 %v358_v12, %v356_v11  ;;  %v360_v18 = vld [vmem:[#allocation3 + $0x168] sm:$0xff]  ;;  %v904_v20 = vpack.c.bf16 %v357_v16, %v355_v15  ;;  %v359_v22 = vld [vmem:[#allocation3 + $0x160] sm:$0xff]  ;;  %v361_v23 = vld [vmem:[#allocation3 + $0x170] sm:$0xff] }
  0x2b   :  { %v906_v21 = vpack.c.bf16 %v362_v19, %v360_v18  ;;  %v55_v24 = vld [vmem:[%s1362_s0 + $0x60] sm:$0xff]  ;;  %v364_v25 = vld [vmem:[#allocation3 + $0x188] sm:$0xff]  ;;  %v908_v27 = vpack.c.bf16 %v361_v23, %v359_v22  ;;  %v365_v30 = vld [vmem:[#allocation3 + $0x190] sm:$0xff] }
  0x2c   :  { %881 = vmatpush1.bf16.msra.mxu0 %v880_v41  ;;  %946 = vmatpush1.bf16.msra.mxu1 %v880_v41  ;;  %v366_v26 = vld [vmem:[#allocation3 + $0x198] sm:$0xff]  ;;  %v363_v29 = vld [vmem:[#allocation3 + $0x180] sm:$0xff]  ;;  %v368_v32 = vld [vmem:[#allocation3 + $0x1a8] sm:$0xff] }
  0x2d   :  { %851 = vmatmul.mubr.msk.f32.gmra.mrb[10].mxu0 %vm73_vm0, %v48_v38  ;;  %883 = vmatprep.subr.bf16.mxu0 %v882_v42  ;;  %v910_v28 = vpack.c.bf16 %v366_v26, %v364_v25  ;;  %v56_v31 = vld [vmem:[%s1362_s0 + $0x68] sm:$0xff]  ;;  %v370_v33 = vld [vmem:[#allocation3 + $0x1b8] sm:$0xff]  ;;  %v912_v34 = vpack.c.bf16 %v365_v30, %v363_v29  ;;  %v369_v37 = vld [vmem:[#allocation3 + $0x1b0] sm:$0xff] }
  0x2e   :  { %222 = vmatprep.mubr.f32.mxu0 %v1017_v1  ;;  %931 = vmatprep.subr.bf16.mxu1 %v882_v42  ;;  %v914_v35 = vpack.c.bf16 %v370_v33, %v368_v32  ;;  %v367_v36 = vld [vmem:[#allocation3 + $0x1a0] sm:$0xff]  ;;  %v57_v38 = vld [vmem:[%s1362_s0 + $0x70] sm:$0xff]  ;;  %v374_v40 = vld [vmem:[#allocation3 + $0x1d8] sm:$0xff] }
  0x2f   :  { %v372_v39 = vld [vmem:[#allocation3 + $0x1c8] sm:$0xff]  ;;  %v916_v41 = vpack.c.bf16 %v369_v37, %v367_v36  ;;  %v371_v43 = vld [vmem:[#allocation3 + $0x1c0] sm:$0xff]  ;;  %v373_v44 = vld [vmem:[#allocation3 + $0x1d0] sm:$0xff] }
  0x30   :  { %885 = vmatpush1.bf16.msra.mxu0 %v884_v48  ;;  %947 = vmatpush1.bf16.msra.mxu1 %v884_v48  ;;  %v918_v42 = vpack.c.bf16 %v374_v40, %v372_v39  ;;  %v920_v46 = vpack.c.bf16 %v373_v44, %v371_v43  ;;  %v376_v47 = vld [vmem:[#allocation3 + $0x1e8] sm:$0xff]  ;;  %v378_v48 = vld [vmem:[#allocation3 + $0x1f8] sm:$0xff]  ;;  %v375_v50 = vld [vmem:[#allocation3 + $0x1e0] sm:$0xff] }
  0x31   :  { %852 = vmatmul.mubr.msk.f32.gmra.mrb[12].mxu0 %vm73_vm0, %v49_v45  ;;  %887 = vmatprep.subr.bf16.mxu0 %v886_v49  ;;  %v58_v45 = vld [vmem:[%s1362_s0 + $0x78] sm:$0xff] }
  0x32   :  { %228 = vmatprep.mubr.f32.mxu0 %v1017_v1  ;;  %932 = vmatprep.subr.bf16.mxu1 %v886_v49  ;;  %v922_v49 = vpack.c.bf16 %v378_v48, %v376_v47  ;;  %v377_v51 = vld [vmem:[#allocation3 + $0x1f0] sm:$0xff] }
  0x34   :  { %889 = vmatpush1.bf16.msra.mxu0 %v888_v55  ;;  %948 = vmatpush1.bf16.msra.mxu1 %v888_v55  ;;  %v61_v55 = vld [vmem:[%s1364_s2] sm:$0x3] }
  0x35   :  { %853 = vmatmul.mubr.msk.f32.gmra.mrb[14].mxu0 %vm73_vm0, %v50_v52  ;;  %891 = vmatprep.subr.bf16.mxu0 %v890_v56  ;;  %v63_v52 = vlaneseq }
  0x36   :  { %234 = vmatprep.mubr.f32.mxu0 %v1017_v1  ;;  %933 = vmatprep.subr.bf16.mxu1 %v890_v56 }
  0x37   :  { %v1162_v53 = vshrl.u32 %v63_v52, 7 }
  0x38   :  { %893 = vmatpush1.bf16.msra.mxu0 %v892_v62  ;;  %949 = vmatpush1.bf16.msra.mxu1 %v892_v62 }
  0x39   :  { %854 = vmatmul.mubr.msk.f32.gmra.mrb[16].mxu0 %vm73_vm0, %v51_v59  ;;  %895 = vmatprep.subr.bf16.mxu0 %v894_v63  ;;  %v1165_v54 = vsub.s32 0, %v1162_v53  ;;  %v1171_v56 = vsub.s32 1, %v1162_v53 }
  0x3a   :  { %240 = vmatprep.mubr.f32.mxu0 %v1017_v1  ;;  %934 = vmatprep.subr.bf16.mxu1 %v894_v63 }
  0x3b   :  { %v1174_v57 = vrot.slane %v61_v55, %v1165_v54  ;;  %v1177_v58 = vrot.slane %v61_v55, %v1171_v56 }
  0x3c   :  { %897 = vmatpush1.bf16.msra.mxu0 %v896_v6  ;;  %950 = vmatpush1.bf16.msra.mxu1 %v896_v6 }
  0x3d   :  { %855 = vmatmul.mubr.msk.f32.gmra.mrb[18].mxu0 %vm73_vm0, %v52_v3  ;;  %899 = vmatprep.subr.bf16.mxu0 %v898_v7 }
  0x3e   :  { %246 = vmatprep.mubr.f32.mxu0 %v1017_v1  ;;  %935 = vmatprep.subr.bf16.mxu1 %v898_v7 }
  0x40   :  { %901 = vmatpush1.bf16.msra.mxu0 %v900_v13  ;;  %951 = vmatpush1.bf16.msra.mxu1 %v900_v13 }
  0x41   :  { %856 = vmatmul.mubr.msk.f32.gmra.mrb[20].mxu0 %vm73_vm0, %v53_v10  ;;  %903 = vmatprep.subr.bf16.mxu0 %v902_v14 }
  0x42   :  { %252 = vmatprep.mubr.f32.mxu0 %v1017_v1  ;;  %936 = vmatprep.subr.bf16.mxu1 %v902_v14 }
  0x44   :  { %905 = vmatpush1.bf16.msra.mxu0 %v904_v20  ;;  %952 = vmatpush1.bf16.msra.mxu1 %v904_v20 }
  0x45   :  { %857 = vmatmul.mubr.msk.f32.gmra.mrb[22].mxu0 %vm73_vm0, %v54_v17  ;;  %907 = vmatprep.subr.bf16.mxu0 %v906_v21 }
  0x46   :  { %258 = vmatprep.mubr.f32.mxu0 %v1017_v1  ;;  %937 = vmatprep.subr.bf16.mxu1 %v906_v21 }
  0x48   :  { %909 = vmatpush1.bf16.msra.mxu0 %v908_v27  ;;  %953 = vmatpush1.bf16.msra.mxu1 %v908_v27 }
  0x49   :  { %858 = vmatmul.mubr.msk.f32.gmra.mrb[24].mxu0 %vm73_vm0, %v55_v24  ;;  %911 = vmatprep.subr.bf16.mxu0 %v910_v28 }
  0x4a   :  { %264 = vmatprep.mubr.f32.mxu0 %v1017_v1  ;;  %938 = vmatprep.subr.bf16.mxu1 %v910_v28 }
  0x4c   :  { %913 = vmatpush1.bf16.msra.mxu0 %v912_v34  ;;  %954 = vmatpush1.bf16.msra.mxu1 %v912_v34 }
  0x4d   :  { %859 = vmatmul.mubr.msk.f32.gmra.mrb[26].mxu0 %vm73_vm0, %v56_v31  ;;  %915 = vmatprep.subr.bf16.mxu0 %v914_v35 }
  0x4e   :  { %270 = vmatprep.mubr.f32.mxu0 %v1017_v1  ;;  %939 = vmatprep.subr.bf16.mxu1 %v914_v35 }
  0x50   :  { %917 = vmatpush1.bf16.msra.mxu0 %v916_v41  ;;  %955 = vmatpush1.bf16.msra.mxu1 %v916_v41 }
  0x51   :  { %860 = vmatmul.mubr.msk.f32.gmra.mrb[28].mxu0 %vm73_vm0, %v57_v38  ;;  %919 = vmatprep.subr.bf16.mxu0 %v918_v42 }
  0x52   :  { %276 = vmatprep.mubr.f32.mxu0 %v1017_v1  ;;  %940 = vmatprep.subr.bf16.mxu1 %v918_v42  ;;  %v924_v1 = vpack.c.bf16 %v377_v51, %v375_v50 }
  0x54   :  { %921 = vmatpush1.bf16.msra.mxu0 %v920_v46  ;;  %956 = vmatpush1.bf16.msra.mxu1 %v920_v46 }
  0x55   :  { %861 = vmatmul.mubr.msk.f32.gmra.mrb[30].mxu0 %vm73_vm0, %v58_v45  ;;  %923 = vmatprep.subr.bf16.mxu0 %v922_v49 }
  0x56   :  { %941 = vmatprep.subr.bf16.mxu1 %v922_v49 }
  0x58   :  { %925 = vmatpush1.bf16.msra.mxu0 %v924_v1  ;;  %957 = vmatpush1.bf16.msra.mxu1 %v924_v1 }
  0xec   :  { %v188_v59 = vpop.f32.mrb[0].mxu0 }
  0xed   :  { %v189_v60 = vadd.f32 %v188_v59, %v1174_v57  ;;  %v190_v61 = vpop.f32.mrb[1].mxu0 }
  0xee   :  { %v191_v62 = vadd.f32 %v190_v61, %v1177_v58 }
  0xef   :  { %v283_v2 = vmax.f32 %v189_v60, 0.0 }
  0xf0   :  { %v284_v63 = vmax.f32 %v191_v62, 0.0  ;;  %v194_v0 = vpop.f32.mrb[2].mxu0 }
  0xf1   :  { %v195_v3 = vadd.f32 %v194_v0, %v1174_v57  ;;  %v196_v4 = vpop.f32.mrb[3].mxu0 }
  0xf2   :  { %v197_v5 = vadd.f32 %v196_v4, %v1177_v58  ;;  %455 = vmatprep.mubr.f32.mxu0 %v284_v63 }
  0xf3   :  { %456 = vmatmul.mubr.f32.vlgmr.msra.gmra.mrb[32].mxu0 %v283_v2  ;;  %v285_v8 = vmax.f32 %v195_v3, 0.0 }
  0xf4   :  { %v286_v6 = vmax.f32 %v197_v5, 0.0  ;;  %v200_v7 = vpop.f32.mrb[4].mxu0 }
  0xf5   :  { %v201_v9 = vadd.f32 %v200_v7, %v1174_v57  ;;  %v202_v10 = vpop.f32.mrb[5].mxu0 }
  0xf6   :  { %v203_v11 = vadd.f32 %v202_v10, %v1177_v58  ;;  %461 = vmatprep.mubr.f32.mxu0 %v286_v6 }
  0xf7   :  { %462 = vmatmul.mubr.f32.gmra.mrb[34].mxu0 %v285_v8  ;;  %v287_v14 = vmax.f32 %v201_v9, 0.0 }
  0xf8   :  { %v288_v12 = vmax.f32 %v203_v11, 0.0  ;;  %v206_v13 = vpop.f32.mrb[6].mxu0 }
  0xf9   :  { %v207_v15 = vadd.f32 %v206_v13, %v1174_v57  ;;  %v208_v16 = vpop.f32.mrb[7].mxu0 }
  0xfa   :  { %v209_v17 = vadd.f32 %v208_v16, %v1177_v58  ;;  %467 = vmatprep.mubr.f32.mxu0 %v288_v12 }
  0xfb   :  { %468 = vmatmul.mubr.f32.gmra.mrb[36].mxu0 %v287_v14  ;;  %v289_v20 = vmax.f32 %v207_v15, 0.0 }
  0xfc   :  { %v290_v18 = vmax.f32 %v209_v17, 0.0  ;;  %v212_v19 = vpop.f32.mrb[8].mxu0 }
  0xfd   :  { %v213_v21 = vadd.f32 %v212_v19, %v1174_v57  ;;  %v214_v22 = vpop.f32.mrb[9].mxu0 }
  0xfe   :  { %v215_v23 = vadd.f32 %v214_v22, %v1177_v58  ;;  %473 = vmatprep.mubr.f32.mxu0 %v290_v18 }
  0xff   :  { %474 = vmatmul.mubr.f32.gmra.mrb[38].mxu0 %v289_v20  ;;  %v291_v26 = vmax.f32 %v213_v21, 0.0 }
 0x100   :  { %v292_v24 = vmax.f32 %v215_v23, 0.0  ;;  %v218_v25 = vpop.f32.mrb[10].mxu0 }
 0x101   :  { %v219_v27 = vadd.f32 %v218_v25, %v1174_v57  ;;  %v220_v28 = vpop.f32.mrb[11].mxu0 }
 0x102   :  { %v221_v29 = vadd.f32 %v220_v28, %v1177_v58  ;;  %479 = vmatprep.mubr.f32.mxu0 %v292_v24 }
 0x103   :  { %480 = vmatmul.mubr.f32.gmra.mrb[40].mxu0 %v291_v26  ;;  %v293_v32 = vmax.f32 %v219_v27, 0.0 }
 0x104   :  { %v294_v30 = vmax.f32 %v221_v29, 0.0  ;;  %v224_v31 = vpop.f32.mrb[12].mxu0 }
 0x105   :  { %v225_v33 = vadd.f32 %v224_v31, %v1174_v57  ;;  %v226_v34 = vpop.f32.mrb[13].mxu0 }
 0x106   :  { %v227_v35 = vadd.f32 %v226_v34, %v1177_v58  ;;  %485 = vmatprep.mubr.f32.mxu0 %v294_v30  ;;  %v1018_v34 = vmov 0  }
 0x107   :  { %v295_v36 = vmax.f32 %v225_v33, 0.0  ;;  %486 = vmatmul.mubr.f32.gmra.mrb[42].mxu0 %v293_v32  ;;  %964 = vset.pattern.permute.xlu1 %v1018_v34 }
 0x108   :  { %v296_v37 = vmax.f32 %v227_v35, 0.0  ;;  %v230_v38 = vpop.f32.mrb[14].mxu0  ;;  %965 = vset.pattern.permute.xlu0 %v1018_v34  ;;  %v379_v35 = vld [vmem:[%s1366_s4] sm:$0x3]  ;;  %s1019_s4 = smov [#allocation6]  }
 0x109   :  { %v231_v39 = vadd.f32 %v230_v38, %v1174_v57  ;;  %v232_v40 = vpop.f32.mrb[15].mxu0 }
 0x10a   :  { %491 = vmatprep.mubr.f32.mxu0 %v296_v37  ;;  %v233_v41 = vadd.f32 %v232_v40, %v1177_v58 }
 0x10b   :  { %v297_v42 = vmax.f32 %v231_v39, 0.0  ;;  %492 = vmatmul.mubr.f32.gmra.mrb[44].mxu0 %v295_v36  ;;  %v1215_v36 = vrot.slane %v379_v35, %v1165_v54 }
 0x10c   :  { %v236_v43 = vpop.f32.mrb[16].mxu0  ;;  %v298_v44 = vmax.f32 %v233_v41, 0.0 }
 0x10d   :  { %v237_v45 = vadd.f32 %v236_v43, %v1174_v57  ;;  %v238_v46 = vpop.f32.mrb[17].mxu0 }
 0x10e   :  { %v239_v47 = vadd.f32 %v238_v46, %v1177_v58  ;;  %497 = vmatprep.mubr.f32.mxu1 %v298_v44 }
 0x10f   :  { %v299_v48 = vmax.f32 %v237_v45, 0.0  ;;  %498 = vmatmul.mubr.f32.vlgmr.msra.gmra.mrb[0].mxu1 %v297_v42 }
 0x110   :  { %v300_v49 = vmax.f32 %v239_v47, 0.0  ;;  %v242_v50 = vpop.f32.mrb[18].mxu0 }
 0x111   :  { %v243_v51 = vadd.f32 %v242_v50, %v1174_v57  ;;  %v244_v1 = vpop.f32.mrb[19].mxu0 }
 0x112   :  { %v245_v55 = vadd.f32 %v244_v1, %v1177_v58  ;;  %503 = vmatprep.mubr.f32.mxu1 %v300_v49 }
 0x113   :  { %v301_v59 = vmax.f32 %v243_v51, 0.0  ;;  %504 = vmatmul.mubr.f32.gmra.mrb[2].mxu1 %v299_v48 }
 0x114   :  { %v302_v60 = vmax.f32 %v245_v55, 0.0  ;;  %v248_v61 = vpop.f32.mrb[20].mxu0 }
 0x115   :  { %v249_v62 = vadd.f32 %v248_v61, %v1174_v57  ;;  %v250_v63 = vpop.f32.mrb[21].mxu0 }
 0x116   :  { %v251_v0 = vadd.f32 %v250_v63, %v1177_v58  ;;  %509 = vmatprep.mubr.f32.mxu1 %v302_v60 }
 0x117   :  { %v303_v2 = vmax.f32 %v249_v62, 0.0  ;;  %510 = vmatmul.mubr.f32.gmra.mrb[4].mxu1 %v301_v59 }
 0x118   :  { %v304_v3 = vmax.f32 %v251_v0, 0.0  ;;  %v254_v4 = vpop.f32.mrb[22].mxu0 }
 0x119   :  { %v255_v5 = vadd.f32 %v254_v4, %v1174_v57  ;;  %v256_v6 = vpop.f32.mrb[23].mxu0 }
 0x11a   :  { %v257_v7 = vadd.f32 %v256_v6, %v1177_v58  ;;  %515 = vmatprep.mubr.f32.mxu1 %v304_v3 }
 0x11b   :  { %v305_v8 = vmax.f32 %v255_v5, 0.0  ;;  %516 = vmatmul.mubr.f32.gmra.mrb[6].mxu1 %v303_v2 }
 0x11c   :  { %v306_v9 = vmax.f32 %v257_v7, 0.0  ;;  %v260_v10 = vpop.f32.mrb[24].mxu0 }
 0x11d   :  { %v261_v11 = vadd.f32 %v260_v10, %v1174_v57  ;;  %v262_v12 = vpop.f32.mrb[25].mxu0 }
 0x11e   :  { %v263_v13 = vadd.f32 %v262_v12, %v1177_v58  ;;  %521 = vmatprep.mubr.f32.mxu1 %v306_v9 }
 0x11f   :  { %v307_v14 = vmax.f32 %v261_v11, 0.0  ;;  %522 = vmatmul.mubr.f32.gmra.mrb[8].mxu1 %v305_v8 }
 0x120   :  { %v308_v15 = vmax.f32 %v263_v13, 0.0  ;;  %v266_v16 = vpop.f32.mrb[26].mxu0 }
 0x121   :  { %v267_v17 = vadd.f32 %v266_v16, %v1174_v57  ;;  %v268_v18 = vpop.f32.mrb[27].mxu0 }
 0x122   :  { %v269_v19 = vadd.f32 %v268_v18, %v1177_v58  ;;  %527 = vmatprep.mubr.f32.mxu1 %v308_v15 }
 0x123   :  { %v309_v20 = vmax.f32 %v267_v17, 0.0  ;;  %528 = vmatmul.mubr.f32.gmra.mrb[10].mxu1 %v307_v14 }
 0x124   :  { %v310_v21 = vmax.f32 %v269_v19, 0.0  ;;  %v272_v22 = vpop.f32.mrb[28].mxu0 }
 0x125   :  { %v273_v23 = vadd.f32 %v272_v22, %v1174_v57  ;;  %v274_v24 = vpop.f32.mrb[29].mxu0 }
 0x126   :  { %v275_v25 = vadd.f32 %v274_v24, %v1177_v58  ;;  %533 = vmatprep.mubr.f32.mxu1 %v310_v21 }
 0x127   :  { %v311_v26 = vmax.f32 %v273_v23, 0.0  ;;  %534 = vmatmul.mubr.f32.gmra.mrb[12].mxu1 %v309_v20 }
 0x128   :  { %v312_v27 = vmax.f32 %v275_v25, 0.0  ;;  %v278_v28 = vpop.f32.mrb[30].mxu0 }
 0x129   :  { %v279_v29 = vadd.f32 %v278_v28, %v1174_v57  ;;  %v280_v30 = vpop.f32.mrb[31].mxu0  ;;  %v1218_v57 = vrot.slane %v379_v35, %v1171_v56 }
 0x12a   :  { %v281_v31 = vadd.f32 %v280_v30, %v1177_v58  ;;  %539 = vmatprep.mubr.f32.mxu1 %v312_v27  ;;  %v584_v58 = vld [vmem:[%s1367_s5] sm:$0x3]  ;;  %s837_s5 = sshll.u32 %s1019_s4, 4  ;;  %s838_s5 = int_to_ptr.vmem [resolvable:$true] %s837_s5 }
 0x12b   :  { %v313_v32 = vmax.f32 %v279_v29, 0.0  ;;  %540 = vmatmul.mubr.f32.gmra.mrb[14].mxu1 %v311_v26  ;;  %v1225_v40 = vrot.slane %v584_v58, %v1165_v54  ;;  %v1229_v42 = vrot.slane %v584_v58, %v1171_v56  ;;  %s988_s28 = scalar_lea.vmem %s838_s5, 16  ;;  %s992_s29 = scalar_lea.vmem %s838_s5, 32 }
 0x12c   :  { %v314_v33 = vmax.f32 %v281_v31, 0.0  ;;  %p989_p8 = scmp.ne.s32.totalorder %s838_s5, %s988_s28  ;;  %p993_p9 = scmp.lt.s32.totalorder %s838_s5, %s838_s5 }
 0x12d   :  { %p994_p10 = scmp.lt.s32.totalorder %s992_s29, %s988_s28 }
 0x12e   :  { %545 = vmatprep.mubr.f32.mxu1 %v314_v33 }
 0x12f   :  { %546 = vmatmul.mubr.f32.gmra.mrb[16].mxu1 %v313_v32  ;;  %p995_p11 = por %p994_p10, %p993_p9 }
 0x131   :  { %p996_p12 = pnand %p995_p11, %p989_p8 }
 0x1c6   :  { %v457_v37 = vpop.f32.mrb[32].mxu0 }
 0x1c7   :  { %v458_v38 = vadd.f32 %v457_v37, %v1215_v36  ;;  %v459_v39 = vpop.f32.mrb[33].mxu0 }
 0x1c8   :  { %v460_v41 = vadd.f32 %v459_v39, %v1218_v57 }
 0x1c9   :  { %v552_v43 = vmax.f32 %v458_v38, 0.0 }
 0x1ca   :  { %v553_v44 = vmax.f32 %v460_v41, 0.0  ;;  %v463_v45 = vpop.f32.mrb[34].mxu0 }
 0x1cb   :  { %v464_v46 = vadd.f32 %v463_v45, %v1215_v36  ;;  %v465_v47 = vpop.f32.mrb[35].mxu0  ;;  %v596_v48 = vmul.f32 %v1225_v40, %v552_v43 }
 0x1cc   :  { %v466_v49 = vadd.f32 %v465_v47, %v1218_v57  ;;  %v597_v50 = vmul.f32 %v1229_v42, %v553_v44 }
 0x1cd   :  { %v554_v51 = vmax.f32 %v464_v46, 0.0 }
 0x1ce   :  { %v555_v1 = vmax.f32 %v466_v49, 0.0  ;;  %v469_v55 = vpop.f32.mrb[36].mxu0  ;;  %v628_v59 = vadd.f32 %v597_v50, %v596_v48 }
 0x1cf   :  { %v598_v60 = vmul.f32 %v1225_v40, %v554_v51  ;;  %v470_v56 = vadd.f32 %v469_v55, %v1215_v36  ;;  %v471_v61 = vpop.f32.mrb[37].mxu0 }
 0x1d0   :  { %v599_v62 = vmul.f32 %v1229_v42, %v555_v1  ;;  %v472_v63 = vadd.f32 %v471_v61, %v1218_v57  ;;  %629 = vadd.xlane.f32.xlu0 %v628_v59 }
 0x1d1   :  { %v556_v0 = vmax.f32 %v470_v56, 0.0 }
 0x1d2   :  { %v557_v2 = vmax.f32 %v472_v63, 0.0  ;;  %v475_v3 = vpop.f32.mrb[38].mxu0  ;;  %v631_v4 = vadd.f32 %v599_v62, %v598_v60 }
 0x1d3   :  { %v476_v5 = vadd.f32 %v475_v3, %v1215_v36  ;;  %v477_v6 = vpop.f32.mrb[39].mxu0  ;;  %v600_v7 = vmul.f32 %v1225_v40, %v556_v0 }
 0x1d4   :  { %v478_v8 = vadd.f32 %v477_v6, %v1218_v57  ;;  %632 = vadd.xlane.f32.xlu0 %v631_v4  ;;  %v601_v9 = vmul.f32 %v1229_v42, %v557_v2 }
 0x1d5   :  { %v558_v10 = vmax.f32 %v476_v5, 0.0 }
 0x1d6   :  { %v559_v11 = vmax.f32 %v478_v8, 0.0  ;;  %v481_v12 = vpop.f32.mrb[40].mxu0  ;;  %v634_v13 = vadd.f32 %v601_v9, %v600_v7 }
 0x1d7   :  { %v602_v14 = vmul.f32 %v1225_v40, %v558_v10  ;;  %v482_v15 = vadd.f32 %v481_v12, %v1215_v36  ;;  %v483_v16 = vpop.f32.mrb[41].mxu0 }
 0x1d8   :  { %v603_v17 = vmul.f32 %v1229_v42, %v559_v11  ;;  %v484_v18 = vadd.f32 %v483_v16, %v1218_v57  ;;  %635 = vadd.xlane.f32.xlu1 %v634_v13 }
 0x1d9   :  { %v560_v19 = vmax.f32 %v482_v15, 0.0 }
 0x1da   :  { %v561_v20 = vmax.f32 %v484_v18, 0.0  ;;  %v487_v21 = vpop.f32.mrb[42].mxu0  ;;  %v637_v22 = vadd.f32 %v603_v17, %v602_v14 }
 0x1db   :  { %v604_v23 = vmul.f32 %v1225_v40, %v560_v19  ;;  %v488_v24 = vadd.f32 %v487_v21, %v1215_v36  ;;  %v489_v25 = vpop.f32.mrb[43].mxu0 }
 0x1dc   :  { %v605_v26 = vmul.f32 %v1229_v42, %v561_v20  ;;  %v490_v27 = vadd.f32 %v489_v25, %v1218_v57  ;;  %638 = vadd.xlane.f32.xlu1 %v637_v22  ;;  %v676_v20 = vld [vmem:[#allocation2] sm:$0x1] }
 0x1dd   :  { %v562_v28 = vmax.f32 %v488_v24, 0.0 }
 0x1de   :  { %v563_v29 = vmax.f32 %v490_v27, 0.0  ;;  %v493_v30 = vpop.f32.mrb[44].mxu0  ;;  %v640_v31 = vadd.f32 %v605_v26, %v604_v23 }
 0x1df   :  { %v606_v32 = vmul.f32 %v1225_v40, %v562_v28  ;;  %v494_v33 = vadd.f32 %v493_v30, %v1215_v36  ;;  %v495_v34 = vpop.f32.mrb[45].mxu0 }
 0x1e0   :  { %v607_v35 = vmul.f32 %v1229_v42, %v563_v29  ;;  %v496_v58 = vadd.f32 %v495_v34, %v1218_v57  ;;  %641 = vadd.xlane.f32.xlu0 %v640_v31 }
 0x1e1   :  { %v564_v37 = vmax.f32 %v494_v33, 0.0 }
 0x1e2   :  { %v565_v38 = vmax.f32 %v496_v58, 0.0  ;;  %v499_v39 = vpop.f32.mrb[0].mxu1  ;;  %v643_v41 = vadd.f32 %v607_v35, %v606_v32 }
 0x1e3   :  { %v608_v43 = vmul.f32 %v1225_v40, %v564_v37  ;;  %v500_v44 = vadd.f32 %v499_v39, %v1215_v36  ;;  %v501_v45 = vpop.f32.mrb[1].mxu1 }
 0x1e4   :  { %v609_v46 = vmul.f32 %v1229_v42, %v565_v38  ;;  %v502_v47 = vadd.f32 %v501_v45, %v1218_v57  ;;  %644 = vadd.xlane.f32.xlu1 %v643_v41 }
 0x1e5   :  { %v566_v48 = vmax.f32 %v500_v44, 0.0 }
 0x1e6   :  { %v567_v49 = vmax.f32 %v502_v47, 0.0  ;;  %v505_v50 = vpop.f32.mrb[2].mxu1  ;;  %v646_v51 = vadd.f32 %v609_v46, %v608_v43 }
 0x1e7   :  { %v610_v1 = vmul.f32 %v1225_v40, %v566_v48  ;;  %v506_v55 = vadd.f32 %v505_v50, %v1215_v36  ;;  %v507_v59 = vpop.f32.mrb[3].mxu1 }
 0x1e8   :  { %v611_v60 = vmul.f32 %v1229_v42, %v567_v49  ;;  %v508_v56 = vadd.f32 %v507_v59, %v1218_v57  ;;  %647 = vadd.xlane.f32.xlu0 %v646_v51 }
 0x1e9   :  { %v568_v61 = vmax.f32 %v506_v55, 0.0 }
 0x1ea   :  { %v569_v62 = vmax.f32 %v508_v56, 0.0  ;;  %v511_v63 = vpop.f32.mrb[4].mxu1  ;;  %v649_v0 = vadd.f32 %v611_v60, %v610_v1 }
 0x1eb   :  { %v612_v2 = vmul.f32 %v1225_v40, %v568_v61  ;;  %v512_v3 = vadd.f32 %v511_v63, %v1215_v36  ;;  %v513_v4 = vpop.f32.mrb[5].mxu1 }
 0x1ec   :  { %v613_v5 = vmul.f32 %v1229_v42, %v569_v62  ;;  %v514_v6 = vadd.f32 %v513_v4, %v1218_v57  ;;  %650 = vadd.xlane.f32.xlu0 %v649_v0 }
 0x1ed   :  { %v570_v7 = vmax.f32 %v512_v3, 0.0 }
 0x1ee   :  { %v571_v8 = vmax.f32 %v514_v6, 0.0  ;;  %v517_v9 = vpop.f32.mrb[6].mxu1  ;;  %v652_v10 = vadd.f32 %v613_v5, %v612_v2 }
 0x1ef   :  { %v614_v11 = vmul.f32 %v1225_v40, %v570_v7  ;;  %v518_v12 = vadd.f32 %v517_v9, %v1215_v36  ;;  %v519_v13 = vpop.f32.mrb[7].mxu1 }
 0x1f0   :  { %v615_v14 = vmul.f32 %v1229_v42, %v571_v8  ;;  %v520_v15 = vadd.f32 %v519_v13, %v1218_v57  ;;  %653 = vadd.xlane.f32.xlu0 %v652_v10 }
 0x1f1   :  { %v572_v16 = vmax.f32 %v518_v12, 0.0 }
 0x1f2   :  { %v573_v17 = vmax.f32 %v520_v15, 0.0  ;;  %v523_v18 = vpop.f32.mrb[8].mxu1  ;;  %v655_v19 = vadd.f32 %v615_v14, %v614_v11 }
 0x1f3   :  { %v616_v21 = vmul.f32 %v1225_v40, %v572_v16  ;;  %v524_v22 = vadd.f32 %v523_v18, %v1215_v36  ;;  %v525_v23 = vpop.f32.mrb[9].mxu1 }
 0x1f4   :  { %v617_v24 = vmul.f32 %v1229_v42, %v573_v17  ;;  %656 = vadd.xlane.f32.xlu0 %v655_v19  ;;  %v526_v25 = vadd.f32 %v525_v23, %v1218_v57  ;;  %v1294_v17 = vand.u32 127, %v63_v52 }
 0x1f5   :  { %v574_v26 = vmax.f32 %v524_v22, 0.0  ;;  %679 = vperm.xlu1 %964, %v676_v20  }
 0x1f6   :  { %v575_v27 = vmax.f32 %v526_v25, 0.0  ;;  %v529_v28 = vpop.f32.mrb[10].mxu1  ;;  %v658_v29 = vadd.f32 %v617_v24, %v616_v21  ;;  %v731_v20 = vadd.s32 4294967280, %v1294_v17  ;;  %v722_v24 = vsub.s32 %v1294_v17, %v1162_v53 }
 0x1f7   :  { %v618_v30 = vmul.f32 %v1225_v40, %v574_v26  ;;  %v530_v31 = vadd.f32 %v529_v28, %v1215_v36  ;;  %v531_v32 = vpop.f32.mrb[11].mxu1  ;;  %v738_v28 = vadd.s32 4294967272, %v1294_v17 }
 0x1f8   :  { %v619_v33 = vmul.f32 %v1229_v42, %v575_v27  ;;  %v532_v34 = vadd.f32 %v531_v32, %v1218_v57  ;;  %659 = vadd.xlane.f32.xlu0 %v658_v29  ;;  %v734_v26 = vsub.s32 %v731_v20, %v1162_v53 }
 0x1f9   :  { %v576_v35 = vmax.f32 %v530_v31, 0.0  ;;  %v745_v31 = vadd.s32 4294967264, %v1294_v17 }
 0x1fa   :  { %v577_v58 = vmax.f32 %v532_v34, 0.0  ;;  %v535_v37 = vpop.f32.mrb[12].mxu1  ;;  %v661_v38 = vadd.f32 %v619_v33, %v618_v30  ;;  %v741_v34 = vsub.s32 %v738_v28, %v1162_v53 }
 0x1fb   :  { %v620_v39 = vmul.f32 %v1225_v40, %v576_v35  ;;  %v536_v41 = vadd.f32 %v535_v37, %v1215_v36  ;;  %v537_v43 = vpop.f32.mrb[13].mxu1 }
 0x1fc   :  { %v621_v44 = vmul.f32 %v1229_v42, %v577_v58  ;;  %v538_v45 = vadd.f32 %v537_v43, %v1218_v57  ;;  %v752_v58 = vadd.s32 4294967256, %v1294_v17  ;;  %v759_v43 = vadd.s32 4294967248, %v1294_v17 }
 0x1fd   :  { %v578_v46 = vmax.f32 %v536_v41, 0.0 }
 0x1fe   :  { %v579_v47 = vmax.f32 %v538_v45, 0.0  ;;  %v541_v48 = vpop.f32.mrb[14].mxu1  ;;  %v664_v49 = vadd.f32 %v621_v44, %v620_v39  ;;  %v748_v39 = vsub.s32 %v745_v31, %v1162_v53 }
 0x1ff   :  { %v622_v50 = vmul.f32 %v1225_v40, %v578_v46  ;;  %v542_v51 = vadd.f32 %v541_v48, %v1215_v36  ;;  %v543_v1 = vpop.f32.mrb[15].mxu1  ;;  %v755_v46 = vsub.s32 %v752_v58, %v1162_v53 }
 0x200   :  { %v623_v55 = vmul.f32 %v1229_v42, %v579_v47  ;;  %v544_v59 = vadd.f32 %v543_v1, %v1218_v57  ;;  %665 = vadd.xlane.f32.xlu0 %v664_v49  ;;  %v762_v49 = vsub.s32 %v759_v43, %v1162_v53 }
 0x201   :  { %v580_v60 = vmax.f32 %v542_v51, 0.0 }
 0x202   :  { %v581_v56 = vmax.f32 %v544_v59, 0.0  ;;  %v547_v61 = vpop.f32.mrb[16].mxu1  ;;  %v667_v62 = vadd.f32 %v623_v55, %v622_v50  ;;  %v766_v50 = vadd.s32 4294967240, %v1294_v17  ;;  %v773_v55 = vadd.s32 4294967232, %v1294_v17 }
 0x203   :  { %v624_v63 = vmul.f32 %v1225_v40, %v580_v60  ;;  %v548_v0 = vadd.f32 %v547_v61, %v1215_v36  ;;  %v549_v2 = vpop.f32.mrb[17].mxu1  ;;  %v780_v60 = vadd.s32 4294967224, %v1294_v17 }
 0x204   :  { %v625_v3 = vmul.f32 %v1229_v42, %v581_v56  ;;  %v550_v4 = vadd.f32 %v549_v2, %v1218_v57  ;;  %668 = vadd.xlane.f32.xlu0 %v667_v62  ;;  %v787_v56 = vadd.s32 4294967216, %v1294_v17  ;;  %v769_v62 = vsub.s32 %v766_v50, %v1162_v53 }
 0x205   :  { %v582_v5 = vmax.f32 %v548_v0, 0.0  ;;  %v776_v2 = vsub.s32 %v773_v55, %v1162_v53 }
 0x206   :  { %v583_v6 = vmax.f32 %v550_v4, 0.0  ;;  %v670_v7 = vadd.f32 %v625_v3, %v624_v63 }
 0x207   :  { %v626_v8 = vmul.f32 %v1225_v40, %v582_v5  ;;  %v783_v5 = vsub.s32 %v780_v60, %v1162_v53 }
 0x208   :  { %v627_v9 = vmul.f32 %v1229_v42, %v583_v6  ;;  %671 = vadd.xlane.f32.xlu0 %v670_v7  ;;  %v724_v42 = vadd.s32 4294967288, %v1294_v17  ;;  %v794_v7 = vadd.s32 4294967208, %v1294_v17 }
 0x20a   :  { %v673_v10 = vadd.f32 %v627_v9, %v626_v8  ;;  %v727_v52 = vsub.s32 %v724_v42, %v1162_v53  ;;  %v790_v9 = vsub.s32 %v787_v56, %v1162_v53 }
 0x20c   :  { %674 = vadd.xlane.f32.xlu0 %v673_v10 }
 0x219   :  { %662 = vadd.xlane.f32.xlu1 %v661_v38 }
 0x25d   :  { %v630_v11 = vpop.xlane.xlu0 %629 }
 0x261   :  { %v633_v12 = vpop.xlane.xlu0 %632 }
 0x265   :  { %v636_v36 = vpop.xlane.xlu1 %635 }
 0x269   :  { %v639_v15 = vpop.xlane.xlu1 %638 }
 0x26d   :  { %v642_v13 = vpop.xlane.xlu0 %641 }
 0x271   :  { %v645_v16 = vpop.xlane.xlu1 %644 }
 0x275   :  { %v648_v14 = vpop.xlane.xlu0 %647  ;;  %v680_v18 = vpop.permute.xlu1 %679 }
 0x276   :  { %v1297_v40 = vrot.slane %v680_v18, %v1165_v54  ;;  %v797_v18 = vsub.s32 %v794_v7, %v1162_v53 }
 0x278   :  { %v686_v22 = vadd.f32 %v1297_v40, %v630_v11  ;;  %v687_v23 = vadd.f32 %v1297_v40, %v633_v12  ;;  %v688_v25 = vadd.f32 %v1297_v40, %v636_v36  ;;  %v689_v32 = vadd.f32 %v1297_v40, %v639_v15 }
 0x279   :  { %v651_v57 = vpop.xlane.xlu0 %650  ;;  %v690_v37 = vadd.f32 %v1297_v40, %v642_v13  ;;  %v691_v44 = vadd.f32 %v1297_v40, %v645_v16  ;;  %v692_v1 = vadd.f32 %v1297_v40, %v648_v14  ;;  %v801_v11 = vadd.s32 4294967200, %v1294_v17 }
 0x27a   :  { %v723_v54 = vrot.slane %v686_v22, %v722_v24  ;;  %v728_v27 = vrot.slane %v687_v23, %v727_v52  ;;  %v735_v30 = vrot.slane %v688_v25, %v734_v26  ;;  %v742_v41 = vrot.slane %v689_v32, %v741_v34 }
 0x27b   :  { %v749_v47 = vrot.slane %v690_v37, %v748_v39  ;;  %v756_v59 = vrot.slane %v691_v44, %v755_v46  ;;  %v693_v63 = vadd.f32 %v1297_v40, %v651_v57  ;;  %v763_v0 = vrot.slane %v692_v1, %v762_v49 }
 0x27c   :  { %v730_v33 = vsel %vm729_vm1, %v728_v27, %v723_v54  ;;  %v808_v36 = vadd.s32 4294967192, %v1294_v17  ;;  %v815_v13 = vadd.s32 4294967184, %v1294_v17  ;;  %v822_v15 = vadd.s32 4294967176, %v1294_v17 }
 0x27d   :  { %v654_v19 = vpop.xlane.xlu0 %653  ;;  %v737_v38 = vsel %vm736_vm2, %v735_v30, %v730_v33  ;;  %v770_v12 = vrot.slane %v693_v63, %v769_v62  ;;  %v804_v42 = vsub.s32 %v801_v11, %v1162_v53 }
 0x27e   :  { %v744_v45 = vsel %vm743_vm3, %v742_v41, %v737_v38  ;;  %v694_v3 = vadd.f32 %v1297_v40, %v654_v19  ;;  %v811_v23 = vsub.s32 %v808_v36, %v1162_v53  ;;  %v818_v52 = vsub.s32 %v815_v13, %v1162_v53 }
 0x27f   :  { %v751_v51 = vsel %vm750_vm4, %v749_v47, %v744_v45  ;;  %v825_v54 = vsub.s32 %v822_v15, %v1162_v53 }
 0x280   :  { %v758_v61 = vsel %vm757_vm5, %v756_v59, %v751_v51  ;;  %v777_v14 = vrot.slane %v694_v3, %v776_v2 }
 0x281   :  { %v657_v21 = vpop.xlane.xlu0 %656  ;;  %v765_v8 = vsel %vm764_vm6, %v763_v0, %v758_v61 }
 0x282   :  { %v695_v6 = vadd.f32 %v1297_v40, %v657_v21  ;;  %v772_v16 = vsel %vm771_vm7, %v770_v12, %v765_v8 }
 0x283   :  { %v779_v25 = vsel %vm778_vm8, %v777_v14, %v772_v16 }
 0x284   :  { %v784_v57 = vrot.slane %v695_v6, %v783_v5 }
 0x285   :  { %v660_v29 = vpop.xlane.xlu0 %659 }
 0x286   :  { %v696_v10 = vadd.f32 %v1297_v40, %v660_v29  ;;  %v786_v27 = vsel %vm785_vm9, %v784_v57, %v779_v25 }
 0x288   :  { %v791_v19 = vrot.slane %v696_v10, %v790_v9 }
 0x28a   :  { %v793_v30 = vsel %vm792_vm10, %v791_v19, %v786_v27 }
 0x28d   :  { %v666_v35 = vpop.xlane.xlu0 %665 }
 0x28e   :  { %v698_v20 = vadd.f32 %v1297_v40, %v666_v35 }
 0x290   :  { %v805_v31 = vrot.slane %v698_v20, %v804_v42 }
 0x291   :  { %v669_v48 = vpop.xlane.xlu0 %668 }
 0x292   :  { %v699_v24 = vadd.f32 %v1297_v40, %v669_v48 }
 0x294   :  { %v812_v32 = vrot.slane %v699_v24, %v811_v23 }
 0x295   :  { %v672_v4 = vpop.xlane.xlu0 %671 }
 0x296   :  { %v700_v26 = vadd.f32 %v1297_v40, %v672_v4 }
 0x298   :  { %v819_v34 = vrot.slane %v700_v26, %v818_v52 }
 0x299   :  { %v675_v21 = vpop.xlane.xlu0 %674 }
 0x29a   :  { %v701_v28 = vadd.f32 %v1297_v40, %v675_v21 }
 0x29c   :  { %v826_v53 = vrot.slane %v701_v28, %v825_v54 }
 0x2a6   :  { %v663_v22 = vpop.xlane.xlu1 %662 }
 0x2a7   :  { %v697_v17 = vadd.f32 %v1297_v40, %v663_v22 }
 0x2a9   :  { %v798_v29 = vrot.slane %v697_v17, %v797_v18 }
 0x2ab   :  { %v800_v33 = vsel %vm799_vm11, %v798_v29, %v793_v30 }
 0x2ac   :  { %v807_v35 = vsel %vm806_vm12, %v805_v31, %v800_v33 }
 0x2ad   :  { %v814_v58 = vsel %vm813_vm13, %v812_v32, %v807_v35 }
 0x2ae   :  { %v821_v37 = vsel %vm820_vm14, %v819_v34, %v814_v58 }
 0x2af   :  { %v828_v38 = vsel %vm827_vm15, %v826_v53, %v821_v37 }
 0x2b0   :  { %830 = vst [vmem:[#allocation6] sm:$0x1] %v828_v38 }
 0x2b1   :  { %999 = shalt.err (!%p996_p12)
}
 0x2b2   :  { %s1000_s9 = scalar_lea.hbm %s1369_s7, 16 }
 0x2b3   :  { %p1001_p13 = scmp.ne.s32.totalorder %s1369_s7, %s1000_s9  ;;  %p1004_p0 = scmp.lt.u32.totalorder %s1000_s9, %s1369_s7 }
 0x2b5   :  { %p1006_p1 = pnand %p1004_p0, %p1001_p13 }
 0x2b7   :  { %1009 = shalt.err (!%p1006_p1)
}
 0x2b8   :  { %840 = dma.vmem_to_hbm [thread:$0]  %s838_s5, 16, %s1369_s7, [#allocation5]  }
 0x2b9   :  { %1012 = dma.done.wait [#allocation5], 16  }
 0x2ba   :  { %1013 = vsyncadd [#allocation5], 4294967280 }
 0x2bb   :  { %844 = vsyncpa [#allocation4], 1 }
 0x2bc   :  { %845 = vsyncpa [#allocation5], 1 }

</bundles_post_ra>
